<compile_context>
chip_gen: v7x
topology: tpu7x:2x2x1
jax: 0.10.0
libtpu: 0.0.40
codegen_flags: <defaults>
</compile_context>

<pallas_src>
import jax
import jax.numpy as jnp
from jax.experimental import pallas as pl
from jax.experimental.pallas import tpu as pltpu

INPUT_DIM = 17
OUTPUT_DIM = 31 * 2            # 62
D0_PAD = 32                    # padded input feature dim
OUT_PAD = 128                  # padded (lane-dense) fc output dim
HIDDEN = (128, 256, 128)       # conv1 / conv2 / conv3 output dims
NODE_TILE = 256                # node row/col tile: multiple of 256 (v6e/v7x) and 128 (v5e)
VMEM_LIMIT = 32 * 1024 * 1024  # explicit scoped-VMEM budget (safe on v5e..v7x)


def _round_up(x, m):
    return ((x + m - 1) // m) * m


def _node_layout(n):
    """Padded node count; small graphs use one full-array tile."""
    if n <= NODE_TILE:
        return _round_up(max(n, 8), 8)
    return _round_up(n, NODE_TILE)


def _tile_for(n_pad):
    return NODE_TILE if (n_pad >= NODE_TILE and n_pad % NODE_TILE == 0) else n_pad


# ----------------------------- GraphConv kernel ----------------------------- #

def _graph_conv_kernel(a_ref, hk_ref, hi_ref, w_ref, b_ref, o_ref, acc_ref):
    """One (row-tile i, col-tile k) step of out = relu(A @ (H W_rel) + H W_root + b)."""
    k = pl.program_id(1)
    d_out = o_ref.shape[-1]

    @pl.when(k == 0)
    def _():
        acc_ref[...] = jnp.zeros_like(acc_ref)

    # Project the k-block of node rows, then aggregate through the A tile.
    xw_rel = jnp.dot(hk_ref[...], w_ref[:, :d_out],
                     preferred_element_type=jnp.float32)
    acc_ref[...] += jnp.dot(a_ref[...], xw_rel.astype(jnp.bfloat16),
                            preferred_element_type=jnp.float32)

    @pl.when(k == pl.num_programs(1) - 1)
    def _():
        xw_root = jnp.dot(hi_ref[...], w_ref[:, d_out:],
                          preferred_element_type=jnp.float32)
        out = acc_ref[...] + xw_root + b_ref[...]   # bias only on lin_rel (PyG semantics)
        o_ref[...] = jnp.maximum(out, 0.0).astype(o_ref.dtype)


def graph_conv(a, h, w, b, d_out, *, tm, tk):
    n_pad = a.shape[0]
    d_in = h.shape[1]
    grid = (n_pad // tm, n_pad // tk)
    return pl.pallas_call(
        _graph_conv_kernel,
        out_shape=jax.ShapeDtypeStruct((n_pad, d_out), jnp.bfloat16),
        grid_spec=pltpu.PrefetchScalarGridSpec(
            num_scalar_prefetch=0,
            grid=grid,
            in_specs=[
                pl.BlockSpec((tm, tk), lambda i, k: (i, k)),           # A tile
                pl.BlockSpec((tk, d_in), lambda i, k: (k, 0)),         # H rows (rel proj)
                pl.BlockSpec((tm, d_in), lambda i, k: (i, 0)),         # H rows (root proj)
                pl.BlockSpec((d_in, 2 * d_out), lambda i, k: (0, 0)),  # resident [W_rel|W_root]
                pl.BlockSpec((1, d_out), lambda i, k: (0, 0)),         # resident bias
            ],
            out_specs=pl.BlockSpec((tm, d_out), lambda i, k: (i, 0)),
            scratch_shapes=[pltpu.VMEM((tm, d_out), jnp.float32)],
        ),
        compiler_params=pltpu.CompilerParams(
            dimension_semantics=("parallel", "arbitrary"),
            vmem_limit_bytes=VMEM_LIMIT),
    )(a, h, h, w, b)


# -------------------------- mean-pool + fc kernel --------------------------- #

def _pool_fc_kernel(p_ref, h_ref, wfc_ref, bfc_ref, o_ref, acc_ref):
    k = pl.program_id(0)

    @pl.when(k == 0)
    def _():
        acc_ref[...] = jnp.zeros_like(acc_ref)

    acc_ref[...] += jnp.dot(p_ref[...], h_ref[...],
                            preferred_element_type=jnp.float32)

    @pl.when(k == pl.num_programs(0) - 1)
    def _():
        logits = jnp.dot(acc_ref[...].astype(jnp.bfloat16), wfc_ref[...],
                         preferred_element_type=jnp.float32) + bfc_ref[...]
        o_ref[...] = jnp.maximum(logits, 0.0)


def pool_fc(p, h, w_fc, b_fc, *, tk):
    g_pad, n_pad = p.shape
    d_h = h.shape[1]
    grid = (n_pad // tk,)
    return pl.pallas_call(
        _pool_fc_kernel,
        out_shape=jax.ShapeDtypeStruct((g_pad, OUT_PAD), jnp.float32),
        grid_spec=pltpu.PrefetchScalarGridSpec(
            num_scalar_prefetch=0,
            grid=grid,
            in_specs=[
                pl.BlockSpec((g_pad, tk), lambda k: (0, k)),
                pl.BlockSpec((tk, d_h), lambda k: (k, 0)),
                pl.BlockSpec((d_h, OUT_PAD), lambda k: (0, 0)),
                pl.BlockSpec((1, OUT_PAD), lambda k: (0, 0)),
            ],
            out_specs=pl.BlockSpec((g_pad, OUT_PAD), lambda k: (0, 0)),
            scratch_shapes=[pltpu.VMEM((g_pad, OUT_PAD), jnp.float32)],
        ),
        compiler_params=pltpu.CompilerParams(
            dimension_semantics=("arbitrary",),
            vmem_limit_bytes=VMEM_LIMIT),
    )(p, h, w_fc, b_fc)


# --------------------------- parameter creation ------------------------------ #

def _linear_init(key, d_in, d_out, bias=True):
    bound = 1.0 / jnp.sqrt(jnp.float32(d_in))
    kw, kb = jax.random.split(key)
    w = jax.random.uniform(kw, (d_in, d_out), jnp.float32, -bound, bound)
    if bias:
        b = jax.random.uniform(kb, (d_out,), jnp.float32, -bound, bound)
        return w, b
    return w, None


def init_params(key):
    """PyTorch-equivalent init.  Returns (kernel params, f32 reference params).

    Kernel params: merged [W_rel | W_root] per layer, ragged dims zero-padded
    (17 -> 32 input, 62 -> 128 fc out), matmul weights in bf16, biases f32.
    """
    dims = [(INPUT_DIM, HIDDEN[0]), (HIDDEN[0], HIDDEN[1]), (HIDDEN[1], HIDDEN[2])]
    keys = jax.random.split(key, 2 * len(dims) + 1)
    params, ref = {}, {}
    for i, (din, dout) in enumerate(dims):
        w_rel, b_rel = _linear_init(keys[2 * i], din, dout, bias=True)
        w_root, _ = _linear_init(keys[2 * i + 1], din, dout, bias=False)
        ref[f"conv{i + 1}"] = dict(w_rel=w_rel, w_root=w_root, b=b_rel)
        w_cat = jnp.concatenate([w_rel, w_root], axis=1)          # (din, 2*dout)
        if i == 0:
            w_cat = jnp.pad(w_cat, ((0, D0_PAD - INPUT_DIM), (0, 0)))
        params[f"conv{i + 1}"] = dict(
            w=w_cat.astype(jnp.bfloat16),
            b=b_rel.reshape(1, -1).astype(jnp.float32))
    w_fc, b_fc = _linear_init(keys[-1], HIDDEN[2], OUTPUT_DIM, bias=True)
    ref["fc"] = dict(w=w_fc, b=b_fc)
    params["fc"] = dict(
        w=jnp.pad(w_fc, ((0, 0), (0, OUT_PAD - OUTPUT_DIM))).astype(jnp.bfloat16),
        b=jnp.pad(b_fc, (0, OUT_PAD - OUTPUT_DIM)).reshape(1, -1).astype(jnp.float32))
    return params, ref


# ------------------------------- forward glue -------------------------------- #

def build_graph_tensors(edge_index, batch, num_nodes, num_graphs):
    """Dense padded adjacency / mean-pool matrices.

    Built ONCE per graph structure and reused across forward calls, so the
    O(N^2) scatter stays off the per-forward hot path.
    """
    n_pad = _node_layout(num_nodes)
    g_pad = _round_up(max(num_graphs, 8), 8)
    src, tgt = edge_index[0], edge_index[1]
    # A[i, j] = number of edges j -> i (PyG GraphConv aggr='add'); zero padding.
    a = jnp.zeros((n_pad, n_pad), jnp.float32).at[tgt, src].add(1.0)
    # P[g, i] = 1 / |graph g| for batch[i] == g; zero padding.
    counts = jnp.zeros((g_pad,), jnp.float32).at[batch].add(1.0)
    onehot = (jnp.arange(g_pad)[:, None] == batch[None, :]).astype(jnp.float32)
    p = onehot / jnp.maximum(counts[:, None], 1.0)
    p = jnp.pad(p, ((0, 0), (0, n_pad - num_nodes)))
    return a.astype(jnp.bfloat16), p.astype(jnp.bfloat16)


def gnn_forward(params, x, a, p, *, num_graphs):
    n_pad = a.shape[0]
    n = x.shape[0]
    tile = _tile_for(n_pad)

    # pad node features 17 -> 32 and N -> n_pad (zeros), cast matmul input to bf16
    xp = jnp.zeros((n_pad, D0_PAD), jnp.float32).at[:n, :INPUT_DIM].set(x)
    h = xp.astype(jnp.bfloat16)

    for i, d_out in enumerate(HIDDEN, start=1):
        layer = params[f"conv{i}"]
        h = graph_conv(a, h, layer["w"], layer["b"], d_out, tm=tile, tk=tile)

    out = pool_fc(p, h, params["fc"]["w"], params["fc"]["b"], tk=tile)
    return out[:num_graphs, :OUTPUT_DIM]


def reference_forward(ref_params, x, edge_index, batch, num_graphs):
    """Pure-JAX f32 reference with PyG GraphConv(aggr='add') semantics."""
    n = x.shape[0]
    a = jnp.zeros((n, n), jnp.float32).at[edge_index[1], edge_index[0]].add(1.0)
    h = x.astype(jnp.float32)
    for i in (1, 2, 3):
        lp = ref_params[f"conv{i}"]
        h = jax.nn.relu((a @ h) @ lp["w_rel"] + h @ lp["w_root"] + lp["b"])
    counts = jnp.zeros((num_graphs,), jnp.float32).at[batch].add(1.0)
    pooled = jnp.zeros((num_graphs, h.shape[1]), jnp.float32).at[batch].add(h)
    pooled = pooled / jnp.maximum(counts[:, None], 1.0)
    return jax.nn.relu(pooled @ ref_params["fc"]["w"] + ref_params["fc"]["b"])


# ----------------------------------- main ------------------------------------ #

if __name__ == "__main__":
    key = jax.random.PRNGKey(0)
    k_param, k_x = jax.random.split(key)

    num_graphs = 2
    nodes_per_graph = 8
    n_nodes = num_graphs * nodes_per_graph

    # node features
    x = jax.random.normal(k_x, (n_nodes, INPUT_DIM), jnp.float32)

    # bidirectional ring edges within each graph (deterministic)
    src_list, tgt_list, batch_list = [], [], []
    for g in range(num_graphs):
        base = g * nodes_per_graph
        for i in range(nodes_per_graph):
            u = base + i
            v = base + (i + 1) % nodes_per_graph
            src_list += [u, v]
            tgt_list += [v, u]
        batch_list += [g] * nodes_per_graph
    edge_index = jnp.array([src_list, tgt_list], dtype=jnp.int32)
    batch = jnp.array(batch_list, dtype=jnp.int32)

    params, ref_params = init_params(k_param)

    # graph-structure tensors built once, off the per-forward hot path
    a, p = build_graph_tensors(edge_index, batch, n_nodes, num_graphs)

    fwd = jax.jit(gnn_forward, static_argnames=("num_graphs",))
    out = fwd(params, x, a, p, num_graphs=num_graphs)
    out = jax.block_until_ready(out)

    assert out.shape == (num_graphs, OUTPUT_DIM), out.shape
    assert bool(jnp.all(jnp.isfinite(out)))

    # validate against an f32 reference with a bf16-appropriate tolerance
    ref = reference_forward(ref_params, x, edge_index, batch, num_graphs)
    assert bool(jnp.allclose(out, ref, rtol=1e-1, atol=1e-1))

    print("KERNEL_OK")
</pallas_src>

<mosaic_0001>
module attributes {stable_mosaic.version = 11 : i64} {
  func.func @_graph_conv_kernel(%arg0: i32, %arg1: i32, %arg2: memref<16x16xbf16, #tpu.memory_space<vmem>>, %arg3: memref<16x32xbf16, #tpu.memory_space<vmem>>, %arg4: memref<16x32xbf16, #tpu.memory_space<vmem>>, %arg5: memref<32x256xbf16, #tpu.memory_space<vmem>>, %arg6: memref<1x128xf32, #tpu.memory_space<vmem>>, %arg7: memref<16x128xbf16, #tpu.memory_space<vmem>>, %arg8: memref<16x128xf32, #tpu.memory_space<vmem>>) attributes {dimension_semantics = [#tpu.dimension_semantics<parallel>, #tpu.dimension_semantics<arbitrary>], iteration_bounds = array<i64: 1, 1>, scalar_prefetch = 0 : i64, scratch_operands = 1 : i64, tpu.core_type = #tpu.core_type<tc>, window_params = [{transform_indices = @transform_0, window_bounds = array<i64: 16, 16>}, {transform_indices = @transform_1, window_bounds = array<i64: 16, 32>}, {transform_indices = @transform_2, window_bounds = array<i64: 16, 32>}, {pipeline_mode = #tpu.pipeline_mode<synchronous>, transform_indices = @transform_3, window_bounds = array<i64: 32, 256>}, {pipeline_mode = #tpu.pipeline_mode<synchronous>, transform_indices = @transform_4, window_bounds = array<i64: 1, 128>}, {transform_indices = @transform_5, window_bounds = array<i64: 16, 128>}]} {
    %c0_i32 = arith.constant 0 : i32
    %0 = arith.cmpi eq, %arg1, %c0_i32 : i32
    %1 = arith.extui %0 : i1 to i32
    %c0_i32_0 = arith.constant 0 : i32
    %2 = arith.cmpi ne, %1, %c0_i32_0 : i32
    scf.if %2 {
      %cst_13 = arith.constant 0.000000e+00 : f32
      %15 = vector.broadcast %cst_13 : f32 to vector<16x128xf32>
      %c0_14 = arith.constant 0 : index
      %c0_15 = arith.constant 0 : index
      %16 = vector.load %arg8[%c0_14, %c0_15] : memref<16x128xf32, #tpu.memory_space<vmem>>, vector<16x128xf32>
      tpu.vector_store %arg8[%c0_14, %c0_15], %15 {strides = array<i32>} : memref<16x128xf32, #tpu.memory_space<vmem>>, vector<16x128xf32>,
    } else {
    }
    %c0 = arith.constant 0 : index
    %c0_1 = arith.constant 0 : index
    %3 = vector.load %arg3[%c0, %c0_1] : memref<16x32xbf16, #tpu.memory_space<vmem>>, vector<16x32xbf16>
    %c0_2 = arith.constant 0 : index
    %c0_3 = arith.constant 0 : index
    %4 = vector.load %arg5[%c0_2, %c0_3] : memref<32x256xbf16, #tpu.memory_space<vmem>>, vector<32x128xbf16>
    %cst = arith.constant dense<0.000000e+00> : vector<16x128xf32>
    %5 = tpu.matmul %3, %4, %cst {dimension_numbers = #tpu.dot_dimension_numbers<[1], [0], [0], [1], [0, 0, 1, 1], [], []>} : vector<16x32xbf16>, vector<32x128xbf16>, vector<16x128xf32> -> vector<16x128xf32>
    %c0_4 = arith.constant 0 : index
    %c0_5 = arith.constant 0 : index
    %6 = vector.load %arg8[%c0_4, %c0_5] : memref<16x128xf32, #tpu.memory_space<vmem>>, vector<16x128xf32>
    %c0_6 = arith.constant 0 : index
    %c0_7 = arith.constant 0 : index
    %7 = vector.load %arg2[%c0_6, %c0_7] : memref<16x16xbf16, #tpu.memory_space<vmem>>, vector<16x16xbf16>
    %8 = arith.truncf %5 : vector<16x128xf32> to vector<16x128xbf16>
    %cst_8 = arith.constant dense<0.000000e+00> : vector<16x128xf32>
    %9 = tpu.matmul %7, %8, %cst_8 {dimension_numbers = #tpu.dot_dimension_numbers<[1], [0], [0], [1], [0, 0, 1, 1], [], []>} : vector<16x16xbf16>, vector<16x128xbf16>, vector<16x128xf32> -> vector<16x128xf32>
    %10 = arith.addf %6, %9 : vector<16x128xf32>
    %c0_9 = arith.constant 0 : index
    %c0_10 = arith.constant 0 : index
    %11 = vector.load %arg8[%c0_9, %c0_10] : memref<16x128xf32, #tpu.memory_space<vmem>>, vector<16x128xf32>
    tpu.vector_store %arg8[%c0_9, %c0_10], %10 {strides = array<i32>} : memref<16x128xf32, #tpu.memory_space<vmem>>, vector<16x128xf32>,
    %c0_i32_11 = arith.constant 0 : i32
    %12 = arith.cmpi eq, %arg1, %c0_i32_11 : i32
    %13 = arith.extui %12 : i1 to i32
    %c0_i32_12 = arith.constant 0 : i32
    %14 = arith.cmpi ne, %13, %c0_i32_12 : i32
    scf.if %14 {
      %c0_13 = arith.constant 0 : index
      %c0_14 = arith.constant 0 : index
      %15 = vector.load %arg4[%c0_13, %c0_14] : memref<16x32xbf16, #tpu.memory_space<vmem>>, vector<16x32xbf16>
      %c0_15 = arith.constant 0 : index
      %c128 = arith.constant 128 : index
      %16 = vector.load %arg5[%c0_15, %c128] : memref<32x256xbf16, #tpu.memory_space<vmem>>, vector<32x128xbf16>
      %cst_16 = arith.constant dense<0.000000e+00> : vector<16x128xf32>
      %17 = tpu.matmul %15, %16, %cst_16 {dimension_numbers = #tpu.dot_dimension_numbers<[1], [0], [0], [1], [0, 0, 1, 1], [], []>} : vector<16x32xbf16>, vector<32x128xbf16>, vector<16x128xf32> -> vector<16x128xf32>
      %c0_17 = arith.constant 0 : index
      %c0_18 = arith.constant 0 : index
      %18 = vector.load %arg8[%c0_17, %c0_18] : memref<16x128xf32, #tpu.memory_space<vmem>>, vector<16x128xf32>
      %19 = arith.addf %18, %17 : vector<16x128xf32>
      %c0_19 = arith.constant 0 : index
      %c0_20 = arith.constant 0 : index
      %20 = vector.load %arg6[%c0_19, %c0_20] : memref<1x128xf32, #tpu.memory_space<vmem>>, vector<1x128xf32>
      %21 = vector.broadcast %20 : vector<1x128xf32> to vector<16x128xf32>
      %22 = arith.addf %19, %21 : vector<16x128xf32>
      %cst_21 = arith.constant 0.000000e+00 : f32
      %23 = vector.broadcast %cst_21 : f32 to vector<16x128xf32>
      %24 = arith.maximumf %22, %23 : vector<16x128xf32>
      %25 = arith.truncf %24 : vector<16x128xf32> to vector<16x128xbf16>
      %c0_22 = arith.constant 0 : index
      %c0_23 = arith.constant 0 : index
      %26 = vector.load %arg7[%c0_22, %c0_23] : memref<16x128xbf16, #tpu.memory_space<vmem>>, vector<16x128xbf16>
      tpu.vector_store %arg7[%c0_22, %c0_23], %25 {strides = array<i32>} : memref<16x128xbf16, #tpu.memory_space<vmem>>, vector<16x128xbf16>,
    } else {
    }
    return
  }
  func.func @transform_0(%arg0: i32, %arg1: i32) -> (i32, i32) {
    %c0_i32 = arith.constant 0 : i32
    return %arg0, %arg1 : i32, i32
  }
  func.func @transform_1(%arg0: i32, %arg1: i32) -> (i32, i32) {
    %c0_i32 = arith.constant 0 : i32
    %c0_i32_0 = arith.constant 0 : i32
    return %arg1, %c0_i32 : i32, i32
  }
  func.func @transform_2(%arg0: i32, %arg1: i32) -> (i32, i32) {
    %c0_i32 = arith.constant 0 : i32
    %c0_i32_0 = arith.constant 0 : i32
    return %arg0, %c0_i32 : i32, i32
  }
  func.func @transform_3(%arg0: i32, %arg1: i32) -> (i32, i32) {
    %c0_i32 = arith.constant 0 : i32
    %c0_i32_0 = arith.constant 0 : i32
    %c0_i32_1 = arith.constant 0 : i32
    return %c0_i32, %c0_i32_0 : i32, i32
  }
  func.func @transform_4(%arg0: i32, %arg1: i32) -> (i32, i32) {
    %c0_i32 = arith.constant 0 : i32
    %c0_i32_0 = arith.constant 0 : i32
    %c0_i32_1 = arith.constant 0 : i32
    return %c0_i32, %c0_i32_0 : i32, i32
  }
  func.func @transform_5(%arg0: i32, %arg1: i32) -> (i32, i32) {
    %c0_i32 = arith.constant 0 : i32
    %c0_i32_0 = arith.constant 0 : i32
    return %arg0, %c0_i32 : i32, i32
  }
}

module attributes {stable_mosaic.version = 11 : i64} {
  func.func @_graph_conv_kernel(%arg0: i32, %arg1: i32, %arg2: memref<16x16xbf16, #tpu.memory_space<vmem>>, %arg3: memref<16x256xbf16, #tpu.memory_space<vmem>>, %arg4: memref<16x256xbf16, #tpu.memory_space<vmem>>, %arg5: memref<256x256xbf16, #tpu.memory_space<vmem>>, %arg6: memref<1x128xf32, #tpu.memory_space<vmem>>, %arg7: memref<16x128xbf16, #tpu.memory_space<vmem>>, %arg8: memref<16x128xf32, #tpu.memory_space<vmem>>) attributes {dimension_semantics = [#tpu.dimension_semantics<parallel>, #tpu.dimension_semantics<arbitrary>], iteration_bounds = array<i64: 1, 1>, scalar_prefetch = 0 : i64, scratch_operands = 1 : i64, tpu.core_type = #tpu.core_type<tc>, window_params = [{transform_indices = @transform_0, window_bounds = array<i64: 16, 16>}, {transform_indices = @transform_1, window_bounds = array<i64: 16, 256>}, {transform_indices = @transform_2, window_bounds = array<i64: 16, 256>}, {pipeline_mode = #tpu.pipeline_mode<synchronous>, transform_indices = @transform_3, window_bounds = array<i64: 256, 256>}, {pipeline_mode = #tpu.pipeline_mode<synchronous>, transform_indices = @transform_4, window_bounds = array<i64: 1, 128>}, {transform_indices = @transform_5, window_bounds = array<i64: 16, 128>}]} {
    %c0_i32 = arith.constant 0 : i32
    %0 = arith.cmpi eq, %arg1, %c0_i32 : i32
    %1 = arith.extui %0 : i1 to i32
    %c0_i32_0 = arith.constant 0 : i32
    %2 = arith.cmpi ne, %1, %c0_i32_0 : i32
    scf.if %2 {
      %cst_13 = arith.constant 0.000000e+00 : f32
      %15 = vector.broadcast %cst_13 : f32 to vector<16x128xf32>
      %c0_14 = arith.constant 0 : index
      %c0_15 = arith.constant 0 : index
      %16 = vector.load %arg8[%c0_14, %c0_15] : memref<16x128xf32, #tpu.memory_space<vmem>>, vector<16x128xf32>
      tpu.vector_store %arg8[%c0_14, %c0_15], %15 {strides = array<i32>} : memref<16x128xf32, #tpu.memory_space<vmem>>, vector<16x128xf32>,
    } else {
    }
    %c0 = arith.constant 0 : index
    %c0_1 = arith.constant 0 : index
    %3 = vector.load %arg3[%c0, %c0_1] : memref<16x256xbf16, #tpu.memory_space<vmem>>, vector<16x256xbf16>
    %c0_2 = arith.constant 0 : index
    %c0_3 = arith.constant 0 : index
    %4 = vector.load %arg5[%c0_2, %c0_3] : memref<256x256xbf16, #tpu.memory_space<vmem>>, vector<256x128xbf16>
    %cst = arith.constant dense<0.000000e+00> : vector<16x128xf32>
    %5 = tpu.matmul %3, %4, %cst {dimension_numbers = #tpu.dot_dimension_numbers<[1], [0], [0], [1], [0, 0, 1, 1], [], []>} : vector<16x256xbf16>, vector<256x128xbf16>, vector<16x128xf32> -> vector<16x128xf32>
    %c0_4 = arith.constant 0 : index
    %c0_5 = arith.constant 0 : index
    %6 = vector.load %arg8[%c0_4, %c0_5] : memref<16x128xf32, #tpu.memory_space<vmem>>, vector<16x128xf32>
    %c0_6 = arith.constant 0 : index
    %c0_7 = arith.constant 0 : index
    %7 = vector.load %arg2[%c0_6, %c0_7] : memref<16x16xbf16, #tpu.memory_space<vmem>>, vector<16x16xbf16>
    %8 = arith.truncf %5 : vector<16x128xf32> to vector<16x128xbf16>
    %cst_8 = arith.constant dense<0.000000e+00> : vector<16x128xf32>
    %9 = tpu.matmul %7, %8, %cst_8 {dimension_numbers = #tpu.dot_dimension_numbers<[1], [0], [0], [1], [0, 0, 1, 1], [], []>} : vector<16x16xbf16>, vector<16x128xbf16>, vector<16x128xf32> -> vector<16x128xf32>
    %10 = arith.addf %6, %9 : vector<16x128xf32>
    %c0_9 = arith.constant 0 : index
    %c0_10 = arith.constant 0 : index
    %11 = vector.load %arg8[%c0_9, %c0_10] : memref<16x128xf32, #tpu.memory_space<vmem>>, vector<16x128xf32>
    tpu.vector_store %arg8[%c0_9, %c0_10], %10 {strides = array<i32>} : memref<16x128xf32, #tpu.memory_space<vmem>>, vector<16x128xf32>,
    %c0_i32_11 = arith.constant 0 : i32
    %12 = arith.cmpi eq, %arg1, %c0_i32_11 : i32
    %13 = arith.extui %12 : i1 to i32
    %c0_i32_12 = arith.constant 0 : i32
    %14 = arith.cmpi ne, %13, %c0_i32_12 : i32
    scf.if %14 {
      %c0_13 = arith.constant 0 : index
      %c0_14 = arith.constant 0 : index
      %15 = vector.load %arg4[%c0_13, %c0_14] : memref<16x256xbf16, #tpu.memory_space<vmem>>, vector<16x256xbf16>
      %c0_15 = arith.constant 0 : index
      %c128 = arith.constant 128 : index
      %16 = vector.load %arg5[%c0_15, %c128] : memref<256x256xbf16, #tpu.memory_space<vmem>>, vector<256x128xbf16>
      %cst_16 = arith.constant dense<0.000000e+00> : vector<16x128xf32>
      %17 = tpu.matmul %15, %16, %cst_16 {dimension_numbers = #tpu.dot_dimension_numbers<[1], [0], [0], [1], [0, 0, 1, 1], [], []>} : vector<16x256xbf16>, vector<256x128xbf16>, vector<16x128xf32> -> vector<16x128xf32>
      %c0_17 = arith.constant 0 : index
      %c0_18 = arith.constant 0 : index
      %18 = vector.load %arg8[%c0_17, %c0_18] : memref<16x128xf32, #tpu.memory_space<vmem>>, vector<16x128xf32>
      %19 = arith.addf %18, %17 : vector<16x128xf32>
      %c0_19 = arith.constant 0 : index
      %c0_20 = arith.constant 0 : index
      %20 = vector.load %arg6[%c0_19, %c0_20] : memref<1x128xf32, #tpu.memory_space<vmem>>, vector<1x128xf32>
      %21 = vector.broadcast %20 : vector<1x128xf32> to vector<16x128xf32>
      %22 = arith.addf %19, %21 : vector<16x128xf32>
      %cst_21 = arith.constant 0.000000e+00 : f32
      %23 = vector.broadcast %cst_21 : f32 to vector<16x128xf32>
      %24 = arith.maximumf %22, %23 : vector<16x128xf32>
      %25 = arith.truncf %24 : vector<16x128xf32> to vector<16x128xbf16>
      %c0_22 = arith.constant 0 : index
      %c0_23 = arith.constant 0 : index
      %26 = vector.load %arg7[%c0_22, %c0_23] : memref<16x128xbf16, #tpu.memory_space<vmem>>, vector<16x128xbf16>
      tpu.vector_store %arg7[%c0_22, %c0_23], %25 {strides = array<i32>} : memref<16x128xbf16, #tpu.memory_space<vmem>>, vector<16x128xbf16>,
    } else {
    }
    return
  }
  func.func @transform_0(%arg0: i32, %arg1: i32) -> (i32, i32) {
    %c0_i32 = arith.constant 0 : i32
    return %arg0, %arg1 : i32, i32
  }
  func.func @transform_1(%arg0: i32, %arg1: i32) -> (i32, i32) {
    %c0_i32 = arith.constant 0 : i32
    %c0_i32_0 = arith.constant 0 : i32
    return %arg1, %c0_i32 : i32, i32
  }
  func.func @transform_2(%arg0: i32, %arg1: i32) -> (i32, i32) {
    %c0_i32 = arith.constant 0 : i32
    %c0_i32_0 = arith.constant 0 : i32
    return %arg0, %c0_i32 : i32, i32
  }
  func.func @transform_3(%arg0: i32, %arg1: i32) -> (i32, i32) {
    %c0_i32 = arith.constant 0 : i32
    %c0_i32_0 = arith.constant 0 : i32
    %c0_i32_1 = arith.constant 0 : i32
    return %c0_i32, %c0_i32_0 : i32, i32
  }
  func.func @transform_4(%arg0: i32, %arg1: i32) -> (i32, i32) {
    %c0_i32 = arith.constant 0 : i32
    %c0_i32_0 = arith.constant 0 : i32
    %c0_i32_1 = arith.constant 0 : i32
    return %c0_i32, %c0_i32_0 : i32, i32
  }
  func.func @transform_5(%arg0: i32, %arg1: i32) -> (i32, i32) {
    %c0_i32 = arith.constant 0 : i32
    %c0_i32_0 = arith.constant 0 : i32
    return %arg0, %c0_i32 : i32, i32
  }
}

module attributes {stable_mosaic.version = 11 : i64} {
  func.func @_pool_fc_kernel(%arg0: i32, %arg1: memref<8x16xbf16, #tpu.memory_space<vmem>>, %arg2: memref<16x128xbf16, #tpu.memory_space<vmem>>, %arg3: memref<128x128xbf16, #tpu.memory_space<vmem>>, %arg4: memref<1x128xf32, #tpu.memory_space<vmem>>, %arg5: memref<8x128xf32, #tpu.memory_space<vmem>>, %arg6: memref<8x128xf32, #tpu.memory_space<vmem>>) attributes {dimension_semantics = [#tpu.dimension_semantics<arbitrary>], iteration_bounds = array<i64: 1>, scalar_prefetch = 0 : i64, scratch_operands = 1 : i64, tpu.core_type = #tpu.core_type<tc>, window_params = [{transform_indices = @transform_0, window_bounds = array<i64: 8, 16>}, {transform_indices = @transform_1, window_bounds = array<i64: 16, 128>}, {pipeline_mode = #tpu.pipeline_mode<synchronous>, transform_indices = @transform_2, window_bounds = array<i64: 128, 128>}, {pipeline_mode = #tpu.pipeline_mode<synchronous>, transform_indices = @transform_3, window_bounds = array<i64: 1, 128>}, {pipeline_mode = #tpu.pipeline_mode<synchronous>, transform_indices = @transform_4, window_bounds = array<i64: 8, 128>}]} {
    %c0_i32 = arith.constant 0 : i32
    %0 = arith.cmpi eq, %arg0, %c0_i32 : i32
    %1 = arith.extui %0 : i1 to i32
    %c0_i32_0 = arith.constant 0 : i32
    %2 = arith.cmpi ne, %1, %c0_i32_0 : i32
    scf.if %2 {
      %cst_10 = arith.constant 0.000000e+00 : f32
      %12 = vector.broadcast %cst_10 : f32 to vector<8x128xf32>
      %c0_11 = arith.constant 0 : index
      %c0_12 = arith.constant 0 : index
      %13 = vector.load %arg6[%c0_11, %c0_12] : memref<8x128xf32, #tpu.memory_space<vmem>>, vector<8x128xf32>
      tpu.vector_store %arg6[%c0_11, %c0_12], %12 {strides = array<i32>} : memref<8x128xf32, #tpu.memory_space<vmem>>, vector<8x128xf32>,
    } else {
    }
    %c0 = arith.constant 0 : index
    %c0_1 = arith.constant 0 : index
    %3 = vector.load %arg6[%c0, %c0_1] : memref<8x128xf32, #tpu.memory_space<vmem>>, vector<8x128xf32>
    %c0_2 = arith.constant 0 : index
    %c0_3 = arith.constant 0 : index
    %4 = vector.load %arg1[%c0_2, %c0_3] : memref<8x16xbf16, #tpu.memory_space<vmem>>, vector<8x16xbf16>
    %c0_4 = arith.constant 0 : index
    %c0_5 = arith.constant 0 : index
    %5 = vector.load %arg2[%c0_4, %c0_5] : memref<16x128xbf16, #tpu.memory_space<vmem>>, vector<16x128xbf16>
    %cst = arith.constant dense<0.000000e+00> : vector<8x128xf32>
    %6 = tpu.matmul %4, %5, %cst {dimension_numbers = #tpu.dot_dimension_numbers<[1], [0], [0], [1], [0, 0, 1, 1], [], []>} : vector<8x16xbf16>, vector<16x128xbf16>, vector<8x128xf32> -> vector<8x128xf32>
    %7 = arith.addf %3, %6 : vector<8x128xf32>
    %c0_6 = arith.constant 0 : index
    %c0_7 = arith.constant 0 : index
    %8 = vector.load %arg6[%c0_6, %c0_7] : memref<8x128xf32, #tpu.memory_space<vmem>>, vector<8x128xf32>
    tpu.vector_store %arg6[%c0_6, %c0_7], %7 {strides = array<i32>} : memref<8x128xf32, #tpu.memory_space<vmem>>, vector<8x128xf32>,
    %c0_i32_8 = arith.constant 0 : i32
    %9 = arith.cmpi eq, %arg0, %c0_i32_8 : i32
    %10 = arith.extui %9 : i1 to i32
    %c0_i32_9 = arith.constant 0 : i32
    %11 = arith.cmpi ne, %10, %c0_i32_9 : i32
    scf.if %11 {
      %c0_10 = arith.constant 0 : index
      %c0_11 = arith.constant 0 : index
      %12 = vector.load %arg6[%c0_10, %c0_11] : memref<8x128xf32, #tpu.memory_space<vmem>>, vector<8x128xf32>
      %13 = arith.truncf %12 : vector<8x128xf32> to vector<8x128xbf16>
      %c0_12 = arith.constant 0 : index
      %c0_13 = arith.constant 0 : index
      %14 = vector.load %arg3[%c0_12, %c0_13] : memref<128x128xbf16, #tpu.memory_space<vmem>>, vector<128x128xbf16>
      %cst_14 = arith.constant dense<0.000000e+00> : vector<8x128xf32>
      %15 = tpu.matmul %13, %14, %cst_14 {dimension_numbers = #tpu.dot_dimension_numbers<[1], [0], [0], [1], [0, 0, 1, 1], [], []>} : vector<8x128xbf16>, vector<128x128xbf16>, vector<8x128xf32> -> vector<8x128xf32>
      %c0_15 = arith.constant 0 : index
      %c0_16 = arith.constant 0 : index
      %16 = vector.load %arg4[%c0_15, %c0_16] : memref<1x128xf32, #tpu.memory_space<vmem>>, vector<1x128xf32>
      %17 = vector.broadcast %16 : vector<1x128xf32> to vector<8x128xf32>
      %18 = arith.addf %15, %17 : vector<8x128xf32>
      %cst_17 = arith.constant 0.000000e+00 : f32
      %19 = vector.broadcast %cst_17 : f32 to vector<8x128xf32>
      %20 = arith.maximumf %18, %19 : vector<8x128xf32>
      %c0_18 = arith.constant 0 : index
      %c0_19 = arith.constant 0 : index
      %21 = vector.load %arg5[%c0_18, %c0_19] : memref<8x128xf32, #tpu.memory_space<vmem>>, vector<8x128xf32>
      tpu.vector_store %arg5[%c0_18, %c0_19], %20 {strides = array<i32>} : memref<8x128xf32, #tpu.memory_space<vmem>>, vector<8x128xf32>,
    } else {
    }
    return
  }
  func.func @transform_0(%arg0: i32) -> (i32, i32) {
    %c0_i32 = arith.constant 0 : i32
    %c0_i32_0 = arith.constant 0 : i32
    return %c0_i32, %arg0 : i32, i32
  }
  func.func @transform_1(%arg0: i32) -> (i32, i32) {
    %c0_i32 = arith.constant 0 : i32
    %c0_i32_0 = arith.constant 0 : i32
    return %arg0, %c0_i32 : i32, i32
  }
  func.func @transform_2(%arg0: i32) -> (i32, i32) {
    %c0_i32 = arith.constant 0 : i32
    %c0_i32_0 = arith.constant 0 : i32
    %c0_i32_1 = arith.constant 0 : i32
    return %c0_i32, %c0_i32_0 : i32, i32
  }
  func.func @transform_3(%arg0: i32) -> (i32, i32) {
    %c0_i32 = arith.constant 0 : i32
    %c0_i32_0 = arith.constant 0 : i32
    %c0_i32_1 = arith.constant 0 : i32
    return %c0_i32, %c0_i32_0 : i32, i32
  }
  func.func @transform_4(%arg0: i32) -> (i32, i32) {
    %c0_i32 = arith.constant 0 : i32
    %c0_i32_0 = arith.constant 0 : i32
    %c0_i32_1 = arith.constant 0 : i32
    return %c0_i32, %c0_i32_0 : i32, i32
  }
}

module attributes {stable_mosaic.version = 11 : i64} {
  func.func @_graph_conv_kernel(%arg0: i32, %arg1: i32, %arg2: memref<16x16xbf16, #tpu.memory_space<vmem>>, %arg3: memref<16x128xbf16, #tpu.memory_space<vmem>>, %arg4: memref<16x128xbf16, #tpu.memory_space<vmem>>, %arg5: memref<128x512xbf16, #tpu.memory_space<vmem>>, %arg6: memref<1x256xf32, #tpu.memory_space<vmem>>, %arg7: memref<16x256xbf16, #tpu.memory_space<vmem>>, %arg8: memref<16x256xf32, #tpu.memory_space<vmem>>) attributes {dimension_semantics = [#tpu.dimension_semantics<parallel>, #tpu.dimension_semantics<arbitrary>], iteration_bounds = array<i64: 1, 1>, scalar_prefetch = 0 : i64, scratch_operands = 1 : i64, tpu.core_type = #tpu.core_type<tc>, window_params = [{transform_indices = @transform_0, window_bounds = array<i64: 16, 16>}, {transform_indices = @transform_1, window_bounds = array<i64: 16, 128>}, {transform_indices = @transform_2, window_bounds = array<i64: 16, 128>}, {pipeline_mode = #tpu.pipeline_mode<synchronous>, transform_indices = @transform_3, window_bounds = array<i64: 128, 512>}, {pipeline_mode = #tpu.pipeline_mode<synchronous>, transform_indices = @transform_4, window_bounds = array<i64: 1, 256>}, {transform_indices = @transform_5, window_bounds = array<i64: 16, 256>}]} {
    %c0_i32 = arith.constant 0 : i32
    %0 = arith.cmpi eq, %arg1, %c0_i32 : i32
    %1 = arith.extui %0 : i1 to i32
    %c0_i32_0 = arith.constant 0 : i32
    %2 = arith.cmpi ne, %1, %c0_i32_0 : i32
    scf.if %2 {
      %cst_13 = arith.constant 0.000000e+00 : f32
      %15 = vector.broadcast %cst_13 : f32 to vector<16x256xf32>
      %c0_14 = arith.constant 0 : index
      %c0_15 = arith.constant 0 : index
      %16 = vector.load %arg8[%c0_14, %c0_15] : memref<16x256xf32, #tpu.memory_space<vmem>>, vector<16x256xf32>
      tpu.vector_store %arg8[%c0_14, %c0_15], %15 {strides = array<i32>} : memref<16x256xf32, #tpu.memory_space<vmem>>, vector<16x256xf32>,
    } else {
    }
    %c0 = arith.constant 0 : index
    %c0_1 = arith.constant 0 : index
    %3 = vector.load %arg3[%c0, %c0_1] : memref<16x128xbf16, #tpu.memory_space<vmem>>, vector<16x128xbf16>
    %c0_2 = arith.constant 0 : index
    %c0_3 = arith.constant 0 : index
    %4 = vector.load %arg5[%c0_2, %c0_3] : memref<128x512xbf16, #tpu.memory_space<vmem>>, vector<128x256xbf16>
    %cst = arith.constant dense<0.000000e+00> : vector<16x256xf32>
    %5 = tpu.matmul %3, %4, %cst {dimension_numbers = #tpu.dot_dimension_numbers<[1], [0], [0], [1], [0, 0, 1, 1], [], []>} : vector<16x128xbf16>, vector<128x256xbf16>, vector<16x256xf32> -> vector<16x256xf32>
    %c0_4 = arith.constant 0 : index
    %c0_5 = arith.constant 0 : index
    %6 = vector.load %arg8[%c0_4, %c0_5] : memref<16x256xf32, #tpu.memory_space<vmem>>, vector<16x256xf32>
    %c0_6 = arith.constant 0 : index
    %c0_7 = arith.constant 0 : index
    %7 = vector.load %arg2[%c0_6, %c0_7] : memref<16x16xbf16, #tpu.memory_space<vmem>>, vector<16x16xbf16>
    %8 = arith.truncf %5 : vector<16x256xf32> to vector<16x256xbf16>
    %cst_8 = arith.constant dense<0.000000e+00> : vector<16x256xf32>
    %9 = tpu.matmul %7, %8, %cst_8 {dimension_numbers = #tpu.dot_dimension_numbers<[1], [0], [0], [1], [0, 0, 1, 1], [], []>} : vector<16x16xbf16>, vector<16x256xbf16>, vector<16x256xf32> -> vector<16x256xf32>
    %10 = arith.addf %6, %9 : vector<16x256xf32>
    %c0_9 = arith.constant 0 : index
    %c0_10 = arith.constant 0 : index
    %11 = vector.load %arg8[%c0_9, %c0_10] : memref<16x256xf32, #tpu.memory_space<vmem>>, vector<16x256xf32>
    tpu.vector_store %arg8[%c0_9, %c0_10], %10 {strides = array<i32>} : memref<16x256xf32, #tpu.memory_space<vmem>>, vector<16x256xf32>,
    %c0_i32_11 = arith.constant 0 : i32
    %12 = arith.cmpi eq, %arg1, %c0_i32_11 : i32
    %13 = arith.extui %12 : i1 to i32
    %c0_i32_12 = arith.constant 0 : i32
    %14 = arith.cmpi ne, %13, %c0_i32_12 : i32
    scf.if %14 {
      %c0_13 = arith.constant 0 : index
      %c0_14 = arith.constant 0 : index
      %15 = vector.load %arg4[%c0_13, %c0_14] : memref<16x128xbf16, #tpu.memory_space<vmem>>, vector<16x128xbf16>
      %c0_15 = arith.constant 0 : index
      %c256 = arith.constant 256 : index
      %16 = vector.load %arg5[%c0_15, %c256] : memref<128x512xbf16, #tpu.memory_space<vmem>>, vector<128x256xbf16>
      %cst_16 = arith.constant dense<0.000000e+00> : vector<16x256xf32>
      %17 = tpu.matmul %15, %16, %cst_16 {dimension_numbers = #tpu.dot_dimension_numbers<[1], [0], [0], [1], [0, 0, 1, 1], [], []>} : vector<16x128xbf16>, vector<128x256xbf16>, vector<16x256xf32> -> vector<16x256xf32>
      %c0_17 = arith.constant 0 : index
      %c0_18 = arith.constant 0 : index
      %18 = vector.load %arg8[%c0_17, %c0_18] : memref<16x256xf32, #tpu.memory_space<vmem>>, vector<16x256xf32>
      %19 = arith.addf %18, %17 : vector<16x256xf32>
      %c0_19 = arith.constant 0 : index
      %c0_20 = arith.constant 0 : index
      %20 = vector.load %arg6[%c0_19, %c0_20] : memref<1x256xf32, #tpu.memory_space<vmem>>, vector<1x256xf32>
      %21 = vector.broadcast %20 : vector<1x256xf32> to vector<16x256xf32>
      %22 = arith.addf %19, %21 : vector<16x256xf32>
      %cst_21 = arith.constant 0.000000e+00 : f32
      %23 = vector.broadcast %cst_21 : f32 to vector<16x256xf32>
      %24 = arith.maximumf %22, %23 : vector<16x256xf32>
      %25 = arith.truncf %24 : vector<16x256xf32> to vector<16x256xbf16>
      %c0_22 = arith.constant 0 : index
      %c0_23 = arith.constant 0 : index
      %26 = vector.load %arg7[%c0_22, %c0_23] : memref<16x256xbf16, #tpu.memory_space<vmem>>, vector<16x256xbf16>
      tpu.vector_store %arg7[%c0_22, %c0_23], %25 {strides = array<i32>} : memref<16x256xbf16, #tpu.memory_space<vmem>>, vector<16x256xbf16>,
    } else {
    }
    return
  }
  func.func @transform_0(%arg0: i32, %arg1: i32) -> (i32, i32) {
    %c0_i32 = arith.constant 0 : i32
    return %arg0, %arg1 : i32, i32
  }
  func.func @transform_1(%arg0: i32, %arg1: i32) -> (i32, i32) {
    %c0_i32 = arith.constant 0 : i32
    %c0_i32_0 = arith.constant 0 : i32
    return %arg1, %c0_i32 : i32, i32
  }
  func.func @transform_2(%arg0: i32, %arg1: i32) -> (i32, i32) {
    %c0_i32 = arith.constant 0 : i32
    %c0_i32_0 = arith.constant 0 : i32
    return %arg0, %c0_i32 : i32, i32
  }
  func.func @transform_3(%arg0: i32, %arg1: i32) -> (i32, i32) {
    %c0_i32 = arith.constant 0 : i32
    %c0_i32_0 = arith.constant 0 : i32
    %c0_i32_1 = arith.constant 0 : i32
    return %c0_i32, %c0_i32_0 : i32, i32
  }
  func.func @transform_4(%arg0: i32, %arg1: i32) -> (i32, i32) {
    %c0_i32 = arith.constant 0 : i32
    %c0_i32_0 = arith.constant 0 : i32
    %c0_i32_1 = arith.constant 0 : i32
    return %c0_i32, %c0_i32_0 : i32, i32
  }
  func.func @transform_5(%arg0: i32, %arg1: i32) -> (i32, i32) {
    %c0_i32 = arith.constant 0 : i32
    %c0_i32_0 = arith.constant 0 : i32
    return %arg0, %c0_i32 : i32, i32
  }
}

</mosaic_0001>

<bundles_post_ra>
// kernel: gnn_forward.5
= control target key start
LH: loop header
LB: loop body
LE: loop exit
PB: predicated region body
PF: predicated region fallthrough
CT: control target
= control target key end

     0   :  { %10 = vsyncpa [#allocation4], 0  ;;  %s690_s0 = inlined_call_operand.vmem [shape: bf16[16,16], index: 0, kind: input, shape index: {}]   ;;  %s691_s1 = inlined_call_operand.vmem [shape: bf16[16,128], index: 1, kind: input, shape index: {}, may-alias: {1,2}]   ;;  %s692_s2 = inlined_call_operand.vmem [shape: bf16[16,128], index: 2, kind: input, shape index: {}, may-alias: {1,2}]   ;;  %s693_s3 = inlined_call_operand.hbm [shape: bf16[128,512], index: 3, kind: input, shape index: {}]   ;;  %s694_s4 = inlined_call_operand.hbm [shape: f32[1,256], index: 4, kind: input, shape index: {}]   ;;  %s695_s5 = inlined_call_operand.vmem [shape: bf16[16,256], index: 5, kind: output, shape index: {}]  }
   0x1   :  { %11 = vsyncpa [#allocation6], 0  ;;  %s616_s18 = smov [#allocation3]   ;;  %s568_s22 = scalar_lea.hbm %s693_s3, 4096 }
   0x2   :  { %s23_s19 = sshll.u32 %s616_s18, 4  ;;  %p569_p0 = scmp.ne.s32.totalorder %s693_s3, %s568_s22  ;;  %s24_s19 = int_to_ptr.vmem [resolvable:$true] %s23_s19 }
   0x3   :  { %p572_p1 = scmp.lt.u32.totalorder %s568_s22, %s693_s3 }
   0x5   :  { %p574_p2 = pnand %p572_p1, %p569_p0 }
   0x7   :  { %577 = shalt.err (!%p574_p2)
}
   0x8   :  { %s578_s27 = scalar_lea.vmem %s24_s19, 4096  ;;  %p583_p4 = scmp.lt.s32.totalorder %s24_s19, %s24_s19 }
   0x9   :  { %p579_p3 = scmp.ne.s32.totalorder %s24_s19, %s578_s27  ;;  %p584_p5 = scmp.lt.s32.totalorder %s578_s27, %s578_s27 }
   0xb   :  { %p585_p6 = por %p584_p5, %p583_p4 }
   0xd   :  { %p586_p7 = pnand %p585_p6, %p579_p3 }
   0xf   :  { %589 = shalt.err (!%p586_p7)
}
  0x10   :  { %s617_s28 = smov 256   ;;  %s618_s29 = smov 16  }
  0x11   :  { %29 = dma.hbm_to_vmem [thread:$0]  %s693_s3, 4096, %s24_s19, [#allocation4], %s617_s28, %s617_s28, %s618_s29  }
  0x12   :  { %s619_s7 = smov [#allocation5]   ;;  %s590_s11 = scalar_lea.hbm %s694_s4, 32 }
  0x13   :  { %s36_s8 = sshll.u32 %s619_s7, 4  ;;  %p591_p8 = scmp.ne.s32.totalorder %s694_s4, %s590_s11  ;;  %s37_s8 = int_to_ptr.vmem [resolvable:$true] %s36_s8 }
  0x14   :  { %p594_p9 = scmp.lt.u32.totalorder %s590_s11, %s694_s4 }
  0x16   :  { %p596_p10 = pnand %p594_p9, %p591_p8 }
  0x18   :  { %599 = shalt.err (!%p596_p10)
}
  0x19   :  { %s600_s16 = scalar_lea.vmem %s37_s8, 32  ;;  %p605_p12 = scmp.lt.s32.totalorder %s37_s8, %s37_s8 }
  0x1a   :  { %p601_p11 = scmp.ne.s32.totalorder %s37_s8, %s600_s16  ;;  %p606_p13 = scmp.lt.s32.totalorder %s600_s16, %s600_s16 }
  0x1c   :  { %p607_p0 = por %p606_p13, %p605_p12 }
  0x1e   :  { %p608_p1 = pnand %p607_p0, %p601_p11 }
  0x20   :  { %611 = shalt.err (!%p608_p1)
}
  0x21   :  { %39 = dma.hbm_to_vmem [thread:$0]  %s694_s4, 32, %s37_s8, [#allocation6]  }
  0x22   :  { %612 = dma.done.wait [#allocation4], 4096  }
  0x23   :  { %613 = vsyncadd [#allocation4], 4294963200 }
  0x24   :  { %614 = dma.done.wait [#allocation6], 32  }
  0x25   :  { %615 = vsyncadd [#allocation6], 4294967264  ;;  %v620_v0 = vmov 0   ;;  %v517_v1 = vld [vmem:[#allocation3 + $0x4] ss:$16 sps:$4 sm:$0xff]   ;;  %vm215_vm0 = vcmask 130048   ;;  %v430_v42 = vlaneseq }
  0x26   :  { %191 = vmatprep.mubr.bf16.mxu0 %v620_v0  ;;  %251 = vmatprep.mubr.bf16.mxu1 %v620_v0  ;;  %v519_v2 = vld [vmem:[#allocation3] ss:$16 sps:$4 sm:$0xff]   ;;  %v520_v3 = vld [vmem:[#allocation3 + $0x24] ss:$16 sps:$4 sm:$0xff]   ;;  %v544_v24 = vld [vmem:[#allocation3 + $0xc] ss:$16 sps:$4 sm:$0xff]  }
  0x27   :  { %159 = vmatprep.subr.bf16.mxu0 %v517_v1  ;;  %v522_v4 = vld [vmem:[#allocation3 + $0x20] ss:$16 sps:$4 sm:$0xff]   ;;  %v523_v5 = vld [vmem:[#allocation3 + $0x44] ss:$16 sps:$4 sm:$0xff]   ;;  %v542_v26 = vld [vmem:[#allocation3 + $0x8] ss:$16 sps:$4 sm:$0xff]  }
  0x28   :  { %160 = vmatpush1.bf16.msra.mxu0 %v519_v2  ;;  %v525_v6 = vld [vmem:[#allocation3 + $0x40] ss:$16 sps:$4 sm:$0xff]   ;;  %v526_v7 = vld [vmem:[#allocation3 + $0x64] ss:$16 sps:$4 sm:$0xff]   ;;  %v548_v27 = vld [vmem:[#allocation3 + $0x2c] ss:$16 sps:$4 sm:$0xff]  }
  0x29   :  { %161 = vmatprep.subr.bf16.mxu0 %v520_v3  ;;  %v528_v8 = vld [vmem:[#allocation3 + $0x60] ss:$16 sps:$4 sm:$0xff]   ;;  %v529_v9 = vld [vmem:[#allocation3 + $0x84] ss:$16 sps:$4 sm:$0xff]   ;;  %v546_v28 = vld [vmem:[#allocation3 + $0x28] ss:$16 sps:$4 sm:$0xff]  }
  0x2a   :  { %v531_v10 = vld [vmem:[#allocation3 + $0x80] ss:$16 sps:$4 sm:$0xff]   ;;  %v532_v11 = vld [vmem:[#allocation3 + $0xa4] ss:$16 sps:$4 sm:$0xff]   ;;  %v551_v29 = vld [vmem:[#allocation3 + $0x4c] ss:$16 sps:$4 sm:$0xff]  }
  0x2b   :  { %v534_v12 = vld [vmem:[#allocation3 + $0xa0] ss:$16 sps:$4 sm:$0xff]   ;;  %v535_v13 = vld [vmem:[#allocation3 + $0xc4] ss:$16 sps:$4 sm:$0xff]   ;;  %v549_v30 = vld [vmem:[#allocation3 + $0x48] ss:$16 sps:$4 sm:$0xff]  }
  0x2c   :  { %162 = vmatpush1.bf16.msra.mxu0 %v522_v4  ;;  %v537_v14 = vld [vmem:[#allocation3 + $0xc0] ss:$16 sps:$4 sm:$0xff]   ;;  %v538_v15 = vld [vmem:[#allocation3 + $0xe4] ss:$16 sps:$4 sm:$0xff]   ;;  %v554_v31 = vld [vmem:[#allocation3 + $0x6c] ss:$16 sps:$4 sm:$0xff]  }
  0x2d   :  { %163 = vmatprep.subr.bf16.mxu0 %v523_v5  ;;  %v540_v16 = vld [vmem:[#allocation3 + $0xe0] ss:$16 sps:$4 sm:$0xff]   ;;  %v552_v32 = vld [vmem:[#allocation3 + $0x68] ss:$16 sps:$4 sm:$0xff]   ;;  %v557_v33 = vld [vmem:[#allocation3 + $0x8c] ss:$16 sps:$4 sm:$0xff]  }
  0x2e   :  { %v541_v17 = vld [vmem:[%s691_s1] sm:$0xff]   ;;  %v555_v34 = vld [vmem:[#allocation3 + $0x88] ss:$16 sps:$4 sm:$0xff]   ;;  %v560_v35 = vld [vmem:[#allocation3 + $0xac] ss:$16 sps:$4 sm:$0xff]   ;;  %v431_v43 = vshrl.u32 %v430_v42, 7 }
  0x2f   :  { %v545_v25 = vld [vmem:[%s690_s0] sm:$0xff]   ;;  %v558_v36 = vld [vmem:[#allocation3 + $0xa8] ss:$16 sps:$4 sm:$0xff]   ;;  %v563_v37 = vld [vmem:[#allocation3 + $0xcc] ss:$16 sps:$4 sm:$0xff]  }
  0x30   :  { %164 = vmatpush1.bf16.msra.mxu0 %v525_v6  ;;  %v561_v38 = vld [vmem:[#allocation3 + $0xc8] ss:$16 sps:$4 sm:$0xff]   ;;  %v566_v39 = vld [vmem:[#allocation3 + $0xec] ss:$16 sps:$4 sm:$0xff]   ;;  %v567_v41 = vld [vmem:[%s692_s2] sm:$0xff]   ;;  %v432_v44 = vsub.s32 0, %v431_v43 }
  0x31   :  { %165 = vmatprep.subr.bf16.mxu0 %v526_v7  ;;  %v564_v40 = vld [vmem:[#allocation3 + $0xe8] ss:$16 sps:$4 sm:$0xff]   ;;  %v428_v45 = vld [vmem:[#allocation5] sm:$0x3]  ;;  %v436_v46 = vsub.s32 1, %v431_v43 }
  0x32   :  { %v433_v47 = vrot.slane %v428_v45, %v432_v44 }
  0x33   :  { %v437_v48 = vrot.slane %v428_v45, %v436_v46 }
  0x34   :  { %166 = vmatpush1.bf16.msra.mxu0 %v528_v8 }
  0x35   :  { %167 = vmatprep.subr.bf16.mxu0 %v529_v9 }
  0x38   :  { %168 = vmatpush1.bf16.msra.mxu0 %v531_v10 }
  0x39   :  { %169 = vmatprep.subr.bf16.mxu0 %v532_v11 }
  0x3c   :  { %170 = vmatpush1.bf16.msra.mxu0 %v534_v12 }
  0x3d   :  { %171 = vmatprep.subr.bf16.mxu0 %v535_v13 }
  0x40   :  { %172 = vmatpush1.bf16.msra.mxu0 %v537_v14 }
  0x41   :  { %173 = vmatprep.subr.bf16.mxu0 %v538_v15 }
  0x44   :  { %174 = vmatpush1.bf16.msra.mxu0 %v540_v16 }
  0x47   :  { %192 = vmatmul.mubr.bf16.vlgmr.msra.gmra.mrb[0].mxu0 %v541_v17 }
 0x11a   :  { %v193_v18 = vpop.f32.mrb[0].mxu0 }
 0x11b   :  { %v195_v19 = vpop.f32.mrb[1].mxu0 }
 0x11c   :  { %v197_v20 = vpop.f32.mrb[2].mxu0 }
 0x11d   :  { %v208_v21 = vpack.c.bf16 %v197_v20, %v193_v18  ;;  %v199_v22 = vpop.f32.mrb[3].mxu0 }
 0x11e   :  { %v209_v23 = vpack.c.bf16 %v199_v22, %v195_v19 }
 0x120   :  { %219 = vmatprep.subr.bf16.mxu1 %v209_v23 }
 0x121   :  { %220 = vmatpush1.bf16.msra.mxu1 %v208_v21 }
 0x122   :  { %377 = vmatprep.subr.bf16.mxu1 %v544_v24 }
 0x124   :  { %486 = vmatmul.mubr.msk.bf16.vlgmr.msra.gmra.mrb[0].mxu1 %vm215_vm0, %v545_v25 }
 0x125   :  { %378 = vmatpush1.bf16.msra.mxu1 %v542_v26  ;;  %409 = vmatprep.mubr.bf16.mxu1 %v620_v0 }
 0x126   :  { %379 = vmatprep.subr.bf16.mxu1 %v548_v27 }
 0x129   :  { %380 = vmatpush1.bf16.msra.mxu1 %v546_v28 }
 0x12a   :  { %381 = vmatprep.subr.bf16.mxu1 %v551_v29 }
 0x12d   :  { %382 = vmatpush1.bf16.msra.mxu1 %v549_v30 }
 0x12e   :  { %383 = vmatprep.subr.bf16.mxu1 %v554_v31 }
 0x131   :  { %384 = vmatpush1.bf16.msra.mxu1 %v552_v32 }
 0x132   :  { %385 = vmatprep.subr.bf16.mxu1 %v557_v33 }
 0x135   :  { %386 = vmatpush1.bf16.msra.mxu1 %v555_v34 }
 0x136   :  { %387 = vmatprep.subr.bf16.mxu1 %v560_v35 }
 0x139   :  { %388 = vmatpush1.bf16.msra.mxu1 %v558_v36 }
 0x13a   :  { %389 = vmatprep.subr.bf16.mxu1 %v563_v37 }
 0x13d   :  { %390 = vmatpush1.bf16.msra.mxu1 %v561_v38 }
 0x13e   :  { %391 = vmatprep.subr.bf16.mxu1 %v566_v39 }
 0x141   :  { %392 = vmatpush1.bf16.msra.mxu1 %v564_v40 }
 0x144   :  { %410 = vmatmul.mubr.bf16.vlgmr.msra.gmra.mrb[0].mxu1 %v567_v41 }
 0x217   :  { %v411_v49 = vpop.f32.mrb[0].mxu1 }
 0x218   :  { %v440_v50 = vadd.f32 %v433_v47, %v411_v49  ;;  %v413_v51 = vpop.f32.mrb[1].mxu1 }
 0x219   :  { %v441_v52 = vadd.f32 %v437_v48, %v413_v51  ;;  %v415_v53 = vpop.f32.mrb[2].mxu1 }
 0x21a   :  { %v444_v54 = vmax.f32 %v440_v50, 0.0  ;;  %v442_v55 = vadd.f32 %v433_v47, %v415_v53  ;;  %v417_v56 = vpop.f32.mrb[3].mxu1 }
 0x21b   :  { %v445_v57 = vmax.f32 %v441_v52, 0.0  ;;  %v443_v58 = vadd.f32 %v437_v48, %v417_v56 }
 0x21c   :  { %v446_v59 = vmax.f32 %v442_v55, 0.0 }
 0x21d   :  { %v506_v60 = vpack.c.bf16 %v445_v57, %v444_v54  ;;  %v447_v61 = vmax.f32 %v443_v58, 0.0 }
 0x21f   :  { %460 = vst [vmem:[%s695_s5] sm:$0xff] %v506_v60  ;;  %v507_v62 = vpack.c.bf16 %v447_v61, %v446_v59 }
 0x221   :  { %461 = vst [vmem:[%s695_s5 + $0x8] sm:$0xff] %v507_v62 }
 0x222   :  { %466 = vsyncpa [#allocation4], 1 }
 0x223   :  { %467 = vsyncpa [#allocation6], 1 }

// kernel: gnn_forward.7
= control target key start
LH: loop header
LB: loop body
LE: loop exit
PB: predicated region body
PF: predicated region fallthrough
CT: control target
= control target key end

     0   :  { %v260_v0 = vmov 0.0   ;;  %vm261_vm0 = vmmov 0   ;;  %vm33_vm1 = vcmask 130048   ;;  %s323_s1 = inlined_call_operand.vmem [shape: bf16[16,128], index: 1, kind: input, shape index: {}]   ;;  %s324_s0 = inlined_call_operand.vmem [shape: bf16[8,16], index: 0, kind: input, shape index: {}]   ;;  %s325_s2 = inlined_call_operand.vmem [shape: bf16[128,128], index: 2, kind: input, shape index: {}]   ;;  %s326_s3 = inlined_call_operand.vmem [shape: f32[1,128], index: 3, kind: input, shape index: {}]   ;;  %s327_s4 = inlined_call_operand.vmem [shape: f32[8,128], index: 4, kind: output, shape index: {}]  }
   0x1   :  { %223 = vmatprep.subr.bf16.mxu0 %v260_v0  ;;  %v251_v1 = vld [vmem:[%s323_s1] sm:$0xff]   ;;  %225 = vmatprep.mubr.msk.bf16.mxu0 %vm261_vm0, %v260_v0  ;;  %v253_v4 = vld [vmem:[%s325_s2 + $0x8] sm:$0xff]   ;;  %v254_v5 = vld [vmem:[%s325_s2 + $0x10] sm:$0xff]  }
   0x2   :  { %v24_v2 = vld [vmem:[%s324_s0] sm:$0xf]  ;;  %229 = vmatprep.subr.bf16.mxu1 %v260_v0  ;;  %245 = vmatprep.mubr.msk.bf16.mxu1 %vm261_vm0, %v260_v0  ;;  %v255_v6 = vld [vmem:[%s325_s2 + $0x18] sm:$0xff]   ;;  %v257_v8 = vld [vmem:[%s325_s2 + $0x28] sm:$0xff]  }
   0x3   :  { %224 = vmatpush3.bf16.msra.mxu0 %v251_v1  ;;  %v252_v3 = vld [vmem:[%s325_s2] sm:$0xff]   ;;  %v258_v9 = vld [vmem:[%s325_s2 + $0x30] sm:$0xff]   ;;  %v259_v10 = vld [vmem:[%s325_s2 + $0x38] sm:$0xff]  }
   0x4   :  { %230 = vmatpush3.bf16.msra.mxu1 %v252_v3  ;;  %v256_v7 = vld [vmem:[%s325_s2 + $0x20] sm:$0xff]  }
   0x5   :  { %231 = vmatprep.subr.bf16.mxu1 %v260_v0  ;;  %v203_v16 = vld [vmem:[%s326_s3] ss:$0 sm:$0xff] }
   0x6   :  { %226 = vmatmul.mubr.msk.bf16.vlgmr.msra.gmra.mrb[0].mxu0 %vm33_vm1, %v24_v2 }
   0x8   :  { %232 = vmatpush3.bf16.msra.mxu1 %v253_v4 }
   0x9   :  { %233 = vmatprep.subr.bf16.mxu1 %v260_v0 }
   0xc   :  { %234 = vmatpush3.bf16.msra.mxu1 %v254_v5 }
   0xd   :  { %235 = vmatprep.subr.bf16.mxu1 %v260_v0 }
  0x10   :  { %236 = vmatpush3.bf16.msra.mxu1 %v255_v6 }
  0x11   :  { %237 = vmatprep.subr.bf16.mxu1 %v260_v0 }
  0x14   :  { %238 = vmatpush3.bf16.msra.mxu1 %v256_v7 }
  0x15   :  { %239 = vmatprep.subr.bf16.mxu1 %v260_v0 }
  0x18   :  { %240 = vmatpush3.bf16.msra.mxu1 %v257_v8 }
  0x19   :  { %241 = vmatprep.subr.bf16.mxu1 %v260_v0 }
  0x1c   :  { %242 = vmatpush3.bf16.msra.mxu1 %v258_v9 }
  0x1d   :  { %243 = vmatprep.subr.bf16.mxu1 %v260_v0 }
  0x20   :  { %244 = vmatpush3.bf16.msra.mxu1 %v259_v10 }
  0xd9   :  { %v71_v11 = vpop.f32.mrb[0].mxu0 }
  0xda   :  { %v83_v12 = vpack.c.bf16 %v71_v11, %v71_v11  ;;  %v227_v13 = vpop.f32.mrb[1].mxu0 }
  0xdb   :  { %v74_v14 = vpop.f32.mrb[2].mxu0 }
  0xdc   :  { %v228_v15 = vpop.f32.mrb[3].mxu0  ;;  %246 = vmatmul.mubr.bf16.vlgmr.msra.gmra.mrb[0].mxu1 %v83_v12 }
 0x1af   :  { %v189_v17 = vpop.f32.mrb[0].mxu1 }
 0x1b0   :  { %v190_v18 = vadd.f32 %v203_v16, %v189_v17  ;;  %v247_v19 = vpop.f32.mrb[1].mxu1 }
 0x1b1   :  { %v192_v20 = vpop.f32.mrb[2].mxu1 }
 0x1b2   :  { %v195_v21 = vmax.f32 %v190_v18, 0.0  ;;  %v248_v22 = vpop.f32.mrb[3].mxu1 }
 0x1b4   :  { %196 = vst [vmem:[%s327_s4] sm:$0xff] %v195_v21 }

// kernel: gnn_forward.4
= control target key start
LH: loop header
LB: loop body
LE: loop exit
PB: predicated region body
PF: predicated region fallthrough
CT: control target
= control target key end

     0   :  { %10 = vsyncpa [#allocation4], 0  ;;  %s469_s0 = inlined_call_operand.vmem [shape: bf16[16,16], index: 0, kind: input, shape index: {}]   ;;  %s470_s1 = inlined_call_operand.vmem [shape: bf16[16,32], index: 1, kind: input, shape index: {}, may-alias: {1,2}]   ;;  %s471_s2 = inlined_call_operand.vmem [shape: bf16[16,32], index: 2, kind: input, shape index: {}, may-alias: {1,2}]   ;;  %s472_s3 = inlined_call_operand.hbm [shape: bf16[32,256], index: 3, kind: input, shape index: {}]   ;;  %s473_s4 = inlined_call_operand.hbm [shape: f32[1,128], index: 4, kind: input, shape index: {}]   ;;  %s474_s5 = inlined_call_operand.vmem [shape: bf16[16,128], index: 5, kind: output, shape index: {}]  }
   0x1   :  { %11 = vsyncpa [#allocation6], 0  ;;  %s392_s18 = smov [#allocation3]   ;;  %s344_s22 = scalar_lea.hbm %s472_s3, 512 }
   0x2   :  { %s23_s19 = sshll.u32 %s392_s18, 4  ;;  %p345_p0 = scmp.ne.s32.totalorder %s472_s3, %s344_s22  ;;  %s24_s19 = int_to_ptr.vmem [resolvable:$true] %s23_s19 }
   0x3   :  { %p348_p1 = scmp.lt.u32.totalorder %s344_s22, %s472_s3 }
   0x5   :  { %p350_p2 = pnand %p348_p1, %p345_p0 }
   0x7   :  { %353 = shalt.err (!%p350_p2)
}
   0x8   :  { %s354_s27 = scalar_lea.vmem %s24_s19, 512  ;;  %p359_p4 = scmp.lt.s32.totalorder %s24_s19, %s24_s19 }
   0x9   :  { %p355_p3 = scmp.ne.s32.totalorder %s24_s19, %s354_s27  ;;  %p360_p5 = scmp.lt.s32.totalorder %s354_s27, %s354_s27 }
   0xb   :  { %p361_p6 = por %p360_p5, %p359_p4 }
   0xd   :  { %p362_p7 = pnand %p361_p6, %p355_p3 }
   0xf   :  { %365 = shalt.err (!%p362_p7)
}
  0x10   :  { %s393_s28 = smov 128   ;;  %s394_s29 = smov 8  }
  0x11   :  { %29 = dma.hbm_to_vmem [thread:$0]  %s472_s3, 512, %s24_s19, [#allocation4], %s393_s28, %s393_s28, %s394_s29  }
  0x12   :  { %s395_s7 = smov [#allocation5]   ;;  %s366_s11 = scalar_lea.hbm %s473_s4, 16 }
  0x13   :  { %s36_s8 = sshll.u32 %s395_s7, 4  ;;  %p367_p8 = scmp.ne.s32.totalorder %s473_s4, %s366_s11  ;;  %s37_s8 = int_to_ptr.vmem [resolvable:$true] %s36_s8 }
  0x14   :  { %p370_p9 = scmp.lt.u32.totalorder %s366_s11, %s473_s4 }
  0x16   :  { %p372_p10 = pnand %p370_p9, %p367_p8 }
  0x18   :  { %375 = shalt.err (!%p372_p10)
}
  0x19   :  { %s376_s16 = scalar_lea.vmem %s37_s8, 16  ;;  %s380_s3 = scalar_lea.vmem %s37_s8, 32 }
  0x1a   :  { %p377_p11 = scmp.ne.s32.totalorder %s37_s8, %s376_s16  ;;  %p381_p12 = scmp.lt.s32.totalorder %s37_s8, %s37_s8 }
  0x1b   :  { %p382_p13 = scmp.lt.s32.totalorder %s380_s3, %s376_s16 }
  0x1d   :  { %p383_p0 = por %p382_p13, %p381_p12 }
  0x1f   :  { %p384_p1 = pnand %p383_p0, %p377_p11 }
  0x21   :  { %387 = shalt.err (!%p384_p1)
}
  0x22   :  { %39 = dma.hbm_to_vmem [thread:$0]  %s473_s4, 16, %s37_s8, [#allocation6]  }
  0x23   :  { %388 = dma.done.wait [#allocation4], 512  }
  0x24   :  { %389 = vsyncadd [#allocation4], 4294966784 }
  0x25   :  { %390 = dma.done.wait [#allocation6], 16  }
  0x26   :  { %391 = vsyncadd [#allocation6], 4294967280  ;;  %v396_v0 = vmov 0.0   ;;  %vm397_vm0 = vmmov 0   ;;  %v337_v1 = vld [vmem:[#allocation3] ss:$8 sps:$4 sm:$0xff]  }
  0x27   :  { %309 = vmatprep.subr.bf16.mxu0 %v396_v0  ;;  %313 = vmatprep.mubr.msk.bf16.mxu0 %vm397_vm0, %v396_v0  ;;  %v338_v2 = vld [vmem:[#allocation3 + $0x10] ss:$8 sps:$4 sm:$0xff]   ;;  %v339_v3 = vld [vmem:[%s470_s1] sm:$0xff]   ;;  %vm76_vm1 = vcmask 261120   ;;  %vm131_vm2 = vcmask 130048  }
  0x28   :  { %317 = vmatprep.subr.bf16.mxu1 %v396_v0  ;;  %319 = vmatprep.mubr.msk.bf16.mxu1 %vm397_vm0, %v396_v0  ;;  %v340_v9 = vld [vmem:[%s469_s0] sm:$0xff]   ;;  %v342_v11 = vld [vmem:[#allocation3 + $0x14] ss:$8 sps:$4 sm:$0xff]  }
  0x29   :  { %310 = vmatpush3.bf16.msra.mxu0 %v337_v1  ;;  %v341_v10 = vld [vmem:[#allocation3 + $0x4] ss:$8 sps:$4 sm:$0xff]   ;;  %v291_v18 = vld [vmem:[#allocation5] ss:$0 sm:$0xff] }
  0x2a   :  { %311 = vmatprep.subr.bf16.mxu0 %v396_v0  ;;  %v343_v12 = vld [vmem:[%s471_s2] sm:$0xff]  }
  0x2d   :  { %312 = vmatpush3.bf16.msra.mxu0 %v338_v2 }
  0x30   :  { %314 = vmatmul.mubr.msk.bf16.vlgmr.msra.gmra.mrb[0].mxu0 %vm76_vm1, %v339_v3 }
 0x103   :  { %v114_v4 = vpop.f32.mrb[0].mxu0 }
 0x104   :  { %v315_v5 = vpop.f32.mrb[1].mxu0 }
 0x105   :  { %v117_v6 = vpop.f32.mrb[2].mxu0 }
 0x106   :  { %v125_v7 = vpack.c.bf16 %v117_v6, %v114_v4  ;;  %v316_v8 = vpop.f32.mrb[3].mxu0 }
 0x108   :  { %318 = vmatpush3.bf16.msra.mxu1 %v125_v7 }
 0x109   :  { %323 = vmatprep.subr.bf16.mxu1 %v396_v0 }
 0x10b   :  { %320 = vmatmul.mubr.msk.bf16.vlgmr.msra.gmra.mrb[0].mxu1 %vm131_vm2, %v340_v9 }
 0x10c   :  { %324 = vmatpush3.bf16.msra.mxu1 %v341_v10  ;;  %327 = vmatprep.mubr.msk.bf16.mxu1 %vm397_vm0, %v396_v0 }
 0x10d   :  { %325 = vmatprep.subr.bf16.mxu1 %v396_v0 }
 0x110   :  { %326 = vmatpush3.bf16.msra.mxu1 %v342_v11 }
 0x113   :  { %328 = vmatmul.mubr.msk.bf16.vlgmr.msra.gmra.mrb[4].mxu1 %vm76_vm1, %v343_v12 }
 0x1de   :  { %v169_v13 = vpop.f32.mrb[0].mxu1 }
 0x1df   :  { %v321_v14 = vpop.f32.mrb[1].mxu1 }
 0x1e0   :  { %v172_v15 = vpop.f32.mrb[2].mxu1 }
 0x1e1   :  { %v322_v16 = vpop.f32.mrb[3].mxu1 }
 0x1e6   :  { %v243_v17 = vpop.f32.mrb[4].mxu1 }
 0x1e7   :  { %v252_v19 = vadd.f32 %v243_v17, %v169_v13  ;;  %v329_v20 = vpop.f32.mrb[5].mxu1 }
 0x1e8   :  { %v246_v21 = vpop.f32.mrb[6].mxu1 }
 0x1e9   :  { %v261_v22 = vadd.f32 %v291_v18, %v252_v19  ;;  %v253_v23 = vadd.f32 %v246_v21, %v172_v15  ;;  %v330_v24 = vpop.f32.mrb[7].mxu1 }
 0x1eb   :  { %v262_v25 = vadd.f32 %v291_v18, %v253_v23  ;;  %v263_v26 = vmax.f32 %v261_v22, 0.0 }
 0x1ed   :  { %v264_v27 = vmax.f32 %v262_v25, 0.0 }
 0x1ef   :  { %v299_v28 = vpack.c.bf16 %v264_v27, %v263_v26 }
 0x1f1   :  { %300 = vst [vmem:[%s474_s5] sm:$0xff] %v299_v28  }
 0x1f2   :  { %279 = vsyncpa [#allocation4], 1 }
 0x1f3   :  { %280 = vsyncpa [#allocation6], 1 }

// kernel: gnn_forward.6
= control target key start
LH: loop header
LB: loop body
LE: loop exit
PB: predicated region body
PF: predicated region fallthrough
CT: control target
= control target key end

     0   :  { %v621_v18 = vmov 0.0   ;;  %vm622_vm0 = vmmov 0   ;;  %vm218_vm1 = vcmask 130048   ;;  %s770_s3 = inlined_call_operand.vmem [shape: bf16[256,256], index: 3, kind: input, shape index: {}]   ;;  %s771_s1 = inlined_call_operand.vmem [shape: bf16[16,256], index: 1, kind: input, shape index: {}, may-alias: {1,2}]   ;;  %s772_s0 = inlined_call_operand.vmem [shape: bf16[16,16], index: 0, kind: input, shape index: {}]   ;;  %s773_s2 = inlined_call_operand.vmem [shape: bf16[16,256], index: 2, kind: input, shape index: {}, may-alias: {1,2}]   ;;  %s774_s4 = inlined_call_operand.vmem [shape: f32[1,128], index: 4, kind: input, shape index: {}]   ;;  %s775_s5 = inlined_call_operand.vmem [shape: bf16[16,128], index: 5, kind: output, shape index: {}]  }
   0x1   :  { %v582_v0 = vld [vmem:[%s770_s3 + $0x80] ss:$8 sps:$4 sm:$0xff]   ;;  %v584_v2 = vld [vmem:[%s770_s3 + $0x90] ss:$8 sps:$4 sm:$0xff]   ;;  %v600_v12 = vld [vmem:[%s771_s1 + $0x4] ss:$8 sps:$4 sm:$0xff]   ;;  %574 = vmatprep.subr.bf16.mxu1 %v621_v18  ;;  %576 = vmatprep.mubr.msk.bf16.mxu1 %vm622_vm0, %v621_v18 }
   0x2   :  { %v583_v1 = vld [vmem:[%s770_s3] ss:$8 sps:$4 sm:$0xff]   ;;  %528 = vmatprep.subr.bf16.mxu0 %v582_v0  ;;  %v585_v3 = vld [vmem:[%s770_s3 + $0x10] ss:$8 sps:$4 sm:$0xff]   ;;  %199 = vmatprep.mubr.bf16.mxu0 %v600_v12  ;;  %v602_v25 = vld [vmem:[%s770_s3 + $0x84] ss:$8 sps:$4 sm:$0xff]  }
   0x3   :  { %529 = vmatpush3.bf16.msra.mxu0 %v583_v1  ;;  %v586_v4 = vld [vmem:[%s770_s3 + $0xa0] ss:$8 sps:$4 sm:$0xff]   ;;  %v588_v6 = vld [vmem:[%s770_s3 + $0xb0] ss:$8 sps:$4 sm:$0xff]   ;;  %v603_v28 = vld [vmem:[%s770_s3 + $0x4] ss:$8 sps:$4 sm:$0xff]  }
   0x4   :  { %530 = vmatprep.subr.bf16.mxu0 %v584_v2  ;;  %v587_v5 = vld [vmem:[%s770_s3 + $0x20] ss:$8 sps:$4 sm:$0xff]   ;;  %v589_v7 = vld [vmem:[%s770_s3 + $0x30] ss:$8 sps:$4 sm:$0xff]   ;;  %v620_v29 = vld [vmem:[%s773_s2 + $0x4] ss:$8 sps:$4 sm:$0xff]  }
   0x5   :  { %v590_v8 = vld [vmem:[%s770_s3 + $0xc0] ss:$8 sps:$4 sm:$0xff]   ;;  %v592_v10 = vld [vmem:[%s770_s3 + $0xd0] ss:$8 sps:$4 sm:$0xff]   ;;  %v604_v30 = vld [vmem:[%s770_s3 + $0x94] ss:$8 sps:$4 sm:$0xff]  }
   0x6   :  { %v591_v9 = vld [vmem:[%s770_s3 + $0x40] ss:$8 sps:$4 sm:$0xff]   ;;  %v593_v11 = vld [vmem:[%s770_s3 + $0x50] ss:$8 sps:$4 sm:$0xff]   ;;  %v605_v31 = vld [vmem:[%s770_s3 + $0x14] ss:$8 sps:$4 sm:$0xff]  }
   0x7   :  { %531 = vmatpush3.bf16.msra.mxu0 %v585_v3  ;;  %v594_v13 = vld [vmem:[%s770_s3 + $0xe0] ss:$8 sps:$4 sm:$0xff]   ;;  %v596_v15 = vld [vmem:[%s770_s3 + $0xf0] ss:$8 sps:$4 sm:$0xff]   ;;  %v606_v32 = vld [vmem:[%s770_s3 + $0xa4] ss:$8 sps:$4 sm:$0xff]  }
   0x8   :  { %532 = vmatprep.subr.bf16.mxu0 %v586_v4  ;;  %v595_v14 = vld [vmem:[%s770_s3 + $0x60] ss:$8 sps:$4 sm:$0xff]   ;;  %v597_v16 = vld [vmem:[%s770_s3 + $0x70] ss:$8 sps:$4 sm:$0xff]   ;;  %v607_v33 = vld [vmem:[%s770_s3 + $0x24] ss:$8 sps:$4 sm:$0xff]  }
   0x9   :  { %v598_v17 = vld [vmem:[%s771_s1] ss:$8 sps:$4 sm:$0xff]   ;;  %v608_v34 = vld [vmem:[%s770_s3 + $0xb4] ss:$8 sps:$4 sm:$0xff]   ;;  %v610_v36 = vld [vmem:[%s770_s3 + $0xc4] ss:$8 sps:$4 sm:$0xff]  }
   0xa   :  { %v601_v27 = vld [vmem:[%s772_s0] sm:$0xff]   ;;  %v609_v35 = vld [vmem:[%s770_s3 + $0x34] ss:$8 sps:$4 sm:$0xff]  }
   0xb   :  { %533 = vmatpush3.bf16.msra.mxu0 %v587_v5  ;;  %v611_v37 = vld [vmem:[%s770_s3 + $0x44] ss:$8 sps:$4 sm:$0xff]   ;;  %v612_v38 = vld [vmem:[%s770_s3 + $0xd4] ss:$8 sps:$4 sm:$0xff]   ;;  %v618_v44 = vld [vmem:[%s773_s2] ss:$8 sps:$4 sm:$0xff]  }
   0xc   :  { %534 = vmatprep.subr.bf16.mxu0 %v588_v6  ;;  %v613_v39 = vld [vmem:[%s770_s3 + $0x54] ss:$8 sps:$4 sm:$0xff]   ;;  %v614_v40 = vld [vmem:[%s770_s3 + $0xe4] ss:$8 sps:$4 sm:$0xff]   ;;  %v518_v53 = vld [vmem:[%s774_s4] ss:$0 sm:$0xff] }
   0xd   :  { %v615_v41 = vld [vmem:[%s770_s3 + $0x64] ss:$8 sps:$4 sm:$0xff]   ;;  %v616_v42 = vld [vmem:[%s770_s3 + $0xf4] ss:$8 sps:$4 sm:$0xff]  }
   0xe   :  { %v617_v43 = vld [vmem:[%s770_s3 + $0x74] ss:$8 sps:$4 sm:$0xff]  }
   0xf   :  { %535 = vmatpush3.bf16.msra.mxu0 %v589_v7 }
  0x10   :  { %536 = vmatprep.subr.bf16.mxu0 %v590_v8 }
  0x13   :  { %537 = vmatpush3.bf16.msra.mxu0 %v591_v9 }
  0x14   :  { %538 = vmatprep.subr.bf16.mxu0 %v592_v10 }
  0x17   :  { %539 = vmatpush3.bf16.msra.mxu0 %v593_v11 }
  0x18   :  { %540 = vmatprep.subr.bf16.mxu0 %v594_v13 }
  0x1b   :  { %541 = vmatpush3.bf16.msra.mxu0 %v595_v14 }
  0x1c   :  { %542 = vmatprep.subr.bf16.mxu0 %v596_v15 }
  0x1f   :  { %543 = vmatpush3.bf16.msra.mxu0 %v597_v16 }
  0x22   :  { %200 = vmatmul.mubr.bf16.vlgmr.msra.gmra.mrb[0].mxu0 %v598_v17 }
  0xf5   :  { %v544_v19 = vpop.f32.mrb[0].mxu0 }
  0xf6   :  { %v545_v20 = vpop.f32.mrb[1].mxu0 }
  0xf7   :  { %v546_v21 = vadd.f32 %v545_v20, %v544_v19  ;;  %v547_v22 = vpop.f32.mrb[2].mxu0 }
  0xf8   :  { %v548_v23 = vpop.f32.mrb[3].mxu0 }
  0xf9   :  { %v549_v24 = vadd.f32 %v548_v23, %v547_v22 }
  0xfb   :  { %v212_v26 = vpack.c.bf16 %v549_v24, %v546_v21 }
  0xfd   :  { %575 = vmatpush3.bf16.msra.mxu1 %v212_v26 }
  0xfe   :  { %552 = vmatprep.subr.bf16.mxu1 %v602_v25 }
 0x100   :  { %577 = vmatmul.mubr.msk.bf16.vlgmr.msra.gmra.mrb[0].mxu1 %vm218_vm1, %v601_v27 }
 0x101   :  { %553 = vmatpush3.bf16.msra.mxu1 %v603_v28  ;;  %442 = vmatprep.mubr.bf16.mxu1 %v620_v29 }
 0x102   :  { %554 = vmatprep.subr.bf16.mxu1 %v604_v30 }
 0x105   :  { %555 = vmatpush3.bf16.msra.mxu1 %v605_v31 }
 0x106   :  { %556 = vmatprep.subr.bf16.mxu1 %v606_v32 }
 0x109   :  { %557 = vmatpush3.bf16.msra.mxu1 %v607_v33 }
 0x10a   :  { %558 = vmatprep.subr.bf16.mxu1 %v608_v34 }
 0x10d   :  { %559 = vmatpush3.bf16.msra.mxu1 %v609_v35 }
 0x10e   :  { %560 = vmatprep.subr.bf16.mxu1 %v610_v36 }
 0x111   :  { %561 = vmatpush3.bf16.msra.mxu1 %v611_v37 }
 0x112   :  { %562 = vmatprep.subr.bf16.mxu1 %v612_v38 }
 0x115   :  { %563 = vmatpush3.bf16.msra.mxu1 %v613_v39 }
 0x116   :  { %564 = vmatprep.subr.bf16.mxu1 %v614_v40 }
 0x119   :  { %565 = vmatpush3.bf16.msra.mxu1 %v615_v41 }
 0x11a   :  { %566 = vmatprep.subr.bf16.mxu1 %v616_v42 }
 0x11d   :  { %567 = vmatpush3.bf16.msra.mxu1 %v617_v43 }
 0x120   :  { %443 = vmatmul.mubr.bf16.vlgmr.msra.gmra.mrb[4].mxu1 %v618_v44 }
 0x1d3   :  { %v256_v45 = vpop.f32.mrb[0].mxu1 }
 0x1d4   :  { %v578_v46 = vpop.f32.mrb[1].mxu1 }
 0x1d5   :  { %v259_v47 = vpop.f32.mrb[2].mxu1 }
 0x1d6   :  { %v579_v48 = vpop.f32.mrb[3].mxu1 }
 0x1f3   :  { %v568_v49 = vpop.f32.mrb[4].mxu1 }
 0x1f4   :  { %v569_v50 = vpop.f32.mrb[5].mxu1 }
 0x1f5   :  { %v570_v51 = vadd.f32 %v569_v50, %v568_v49  ;;  %v571_v52 = vpop.f32.mrb[6].mxu1 }
 0x1f6   :  { %v572_v54 = vpop.f32.mrb[7].mxu1 }
 0x1f7   :  { %v453_v55 = vadd.f32 %v570_v51, %v256_v45  ;;  %v573_v56 = vadd.f32 %v572_v54, %v571_v52 }
 0x1f9   :  { %v462_v57 = vadd.f32 %v518_v53, %v453_v55  ;;  %v454_v58 = vadd.f32 %v573_v56, %v259_v47 }
 0x1fb   :  { %v463_v59 = vadd.f32 %v518_v53, %v454_v58  ;;  %v464_v60 = vmax.f32 %v462_v57, 0.0 }
 0x1fd   :  { %v465_v61 = vmax.f32 %v463_v59, 0.0 }
 0x1ff   :  { %v526_v62 = vpack.c.bf16 %v465_v61, %v464_v60 }
 0x201   :  { %527 = vst [vmem:[%s775_s5] sm:$0xff] %v526_v62  }

</bundles_post_ra>
